<compile_context>
chip_gen: v5e
topology: v5e:2x2
jax: 0.10.0
libtpu: 0.0.40
codegen_flags: <defaults>
</compile_context>

<pallas_src>
import numpy as np
import jax
import jax.numpy as jnp
from jax.experimental import pallas as pl
from jax.experimental.pallas import tpu as pltpu


# ---------------------------------------------------------------------------
# Setup glue: pooling / upsampling operators as dense matrices (pure numpy).
# ---------------------------------------------------------------------------
def _adaptive_pool_matrix(in_size: int, level: int) -> np.ndarray:
    """P[i, h] = 1/bin_size if h in bin i else 0 (adaptive_avg_pool1d semantics)."""
    P = np.zeros((level, in_size), dtype=np.float32)
    for i in range(level):
        start = (i * in_size) // level
        end = -(-((i + 1) * in_size) // level)  # ceil
        P[i, start:end] = 1.0 / float(end - start)
    return P


def _bilinear_upsample_matrix(out_size: int, level: int) -> np.ndarray:
    """U[h, i] = interpolation weight, align_corners=True semantics."""
    U = np.zeros((out_size, level), dtype=np.float32)
    for h in range(out_size):
        if level == 1 or out_size == 1:
            src = 0.0
        else:
            src = h * (level - 1) / (out_size - 1)
        i0 = min(int(np.floor(src)), level - 1)
        i1 = min(i0 + 1, level - 1)
        frac = src - i0
        U[h, i0] += 1.0 - frac
        U[h, i1] += frac
    return U


def _round_up(x: int, m: int) -> int:
    return ((x + m - 1) // m) * m


def _prepare_branch_operands(w_conv, gamma, beta, run_mean, run_var, level, H, W, eps):
    """Fold eval-mode BN into the conv weight; build pool/upsample matrices.

    Returns bf16 (Pk, Uk, w_eff) and f32 shift. Shared by the kernel wrapper and
    the pure-JAX reference so both paths see bit-identical quantized operands.
    """
    P = np.kron(_adaptive_pool_matrix(H, level), _adaptive_pool_matrix(W, level))      # (L2, HW)
    U = np.kron(_bilinear_upsample_matrix(H, level), _bilinear_upsample_matrix(W, level))  # (HW, L2)
    Pk = jnp.asarray(P.T).astype(jnp.bfloat16)     # (HW, L2)  pool:      x @ Pk
    Uk = jnp.asarray(U.T).astype(jnp.bfloat16)     # (L2, HW)  upsample:  y @ Uk
    scale = gamma / jnp.sqrt(run_var + eps)                        # (C_out,)
    shift = (beta - run_mean * scale).astype(jnp.float32)          # (C_out,)
    w_eff = (scale[:, None] * w_conv).astype(jnp.bfloat16)         # BN scale folded into conv
    return Pk, Uk, w_eff, shift


# ---------------------------------------------------------------------------
# Pallas kernel: one (batch, C_in-tile) step of pool -> conv -> BN+ReLU -> upsample
# ---------------------------------------------------------------------------
def _spp_branch_kernel(x_ref, pk_ref, w_ref, shift_ref, uk_ref, out_ref, acc_ref):
    c = pl.program_id(1)

    @pl.when(c == 0)
    def _init():
        acc_ref[...] = jnp.zeros_like(acc_ref)

    # Adaptive average pool:  (c_tile, HW_pad) @ (HW_pad, L2) -> (c_tile, L2)
    pooled = jnp.dot(x_ref[...], pk_ref[...], preferred_element_type=jnp.float32)
    # 1x1 conv (BN scale pre-folded into the weight), accumulated across C_in tiles.
    acc_ref[...] += jnp.dot(w_ref[...], pooled.astype(jnp.bfloat16),
                            preferred_element_type=jnp.float32)

    @pl.when(c == pl.num_programs(1) - 1)
    def _finalize():
        y = jnp.maximum(acc_ref[...] + shift_ref[...], 0.0)        # BN shift + ReLU
        # Bilinear upsample (align_corners=True): (C_out, L2) @ (L2, HW_pad)
        out_ref[...] = jnp.dot(y.astype(jnp.bfloat16), uk_ref[...],
                               preferred_element_type=jnp.float32).astype(out_ref.dtype)


def spp_block(x, w_conv, gamma, beta, run_mean, run_var, level, eps=1e-5,
              c_tile_max=256):
    """One SppBlock branch.  x: (N, C_in, H, W) f32 -> (N, C_out, H, W) f32."""
    N, C_in, H, W = x.shape
    C_out = w_conv.shape[0]
    HW = H * W
    L2 = level * level
    HW_pad = _round_up(HW, 128)                  # lane-dense output stores

    # Channel-reduction tiling: bounds the VMEM working set at large C_in.
    if C_in <= c_tile_max:
        C_in_pad, c_tile = C_in, C_in
    else:
        C_in_pad = _round_up(C_in, c_tile_max)
        c_tile = c_tile_max
    n_ct = C_in_pad // c_tile

    Pk, Uk, w_eff, shift = _prepare_branch_operands(
        w_conv, gamma, beta, run_mean, run_var, level, H, W, eps)

    # Zero-pad operands (zero channels / zero spatial columns contribute nothing).
    x_flat = x.reshape(N, C_in, HW).astype(jnp.bfloat16)
    if C_in_pad != C_in or HW_pad != HW:
        x_flat = jnp.pad(x_flat, ((0, 0), (0, C_in_pad - C_in), (0, HW_pad - HW)))
    if C_in_pad != C_in:
        w_eff = jnp.pad(w_eff, ((0, 0), (0, C_in_pad - C_in)))
    if HW_pad != HW:
        Pk = jnp.pad(Pk, ((0, HW_pad - HW), (0, 0)))
        Uk = jnp.pad(Uk, ((0, 0), (0, HW_pad - HW)))
    shift2d = shift.reshape(C_out, 1)

    # Rough double-buffered working set -> explicit scoped-VMEM limit (16..64 MiB).
    vmem_bytes = (2 * c_tile * HW_pad * 2            # x tile (bf16), double-buffered
                  + 2 * C_out * c_tile * 2           # weight tile (bf16), double-buffered
                  + 4 * L2 * HW_pad * 2              # Pk + Uk (bf16)
                  + 2 * C_out * HW_pad * 4           # output block (f32)
                  + C_out * L2 * 4 + C_out * 4)      # accumulator + shift
    vmem_limit = int(min(max(2 * vmem_bytes, 16 * 1024 * 1024), 64 * 1024 * 1024))

    cost = pl.CostEstimate(
        flops=int(2 * N * L2 * (C_in_pad * HW_pad + C_out * C_in_pad + C_out * HW_pad)),
        transcendentals=0,
        bytes_accessed=int(N * C_in_pad * HW_pad * 2 + N * C_out * HW_pad * 4
                           + 2 * L2 * HW_pad * 2 + C_out * C_in_pad * 2 + C_out * 4),
    )

    out_flat = pl.pallas_call(
        _spp_branch_kernel,
        out_shape=jax.ShapeDtypeStruct((N, C_out, HW_pad), jnp.float32),
        grid=(N, n_ct),
        in_specs=[
            pl.BlockSpec((None, c_tile, HW_pad), lambda n, c: (n, c, 0)),   # x tile
            pl.BlockSpec((HW_pad, L2), lambda n, c: (0, 0)),                # Pk
            pl.BlockSpec((C_out, c_tile), lambda n, c: (0, c)),             # weight tile
            pl.BlockSpec((C_out, 1), lambda n, c: (0, 0)),                  # BN shift
            pl.BlockSpec((L2, HW_pad), lambda n, c: (0, 0)),                # Uk
        ],
        out_specs=pl.BlockSpec((None, C_out, HW_pad), lambda n, c: (n, 0, 0)),
        scratch_shapes=[pltpu.VMEM((C_out, L2), jnp.float32)],
        compiler_params=pltpu.CompilerParams(
            dimension_semantics=("parallel", "arbitrary"),
            vmem_limit_bytes=vmem_limit),
        cost_estimate=cost,
    )(x_flat, Pk, w_eff, shift2d, Uk)

    return out_flat[:, :, :HW].reshape(N, C_out, H, W)


def spp_forward(x, branch_params, eps=1e-5):
    """SPP.forward: four SppBlock branches (levels 1, 2, 3, 6) + channel concat."""
    outs = [x]
    for level in (1, 2, 3, 6):
        w, g, b, m, v = branch_params[level]
        outs.append(spp_block(x, w, g, b, m, v, level, eps))
    # TODO(synk): the final channel concat is plain jnp.concatenate (pure data
    # movement); it is not fused into the Pallas kernels.
    return jnp.concatenate(outs, axis=1)


# ---------------------------------------------------------------------------
# Pure-JAX reference (einsum path, same bf16 quantization points) for sanity check.
# ---------------------------------------------------------------------------
def _spp_block_ref(x, w_conv, gamma, beta, run_mean, run_var, level, eps=1e-5):
    N, C_in, H, W = x.shape
    C_out = w_conv.shape[0]
    f32 = jnp.float32
    Pk, Uk, w_eff, shift = _prepare_branch_operands(
        w_conv, gamma, beta, run_mean, run_var, level, H, W, eps)
    xq = x.reshape(N, C_in, H * W).astype(jnp.bfloat16).astype(f32)
    pooled = jnp.einsum('ncs,sl->ncl', xq, Pk.astype(f32))
    conv = jnp.einsum('oc,ncl->nol', w_eff.astype(f32),
                      pooled.astype(jnp.bfloat16).astype(f32))
    y = jnp.maximum(conv + shift[None, :, None], 0.0)
    up = jnp.einsum('nol,ls->nos', y.astype(jnp.bfloat16).astype(f32), Uk.astype(f32))
    return up.reshape(N, C_out, H, W)


def spp_forward_ref(x, branch_params, eps=1e-5):
    outs = [x]
    for level in (1, 2, 3, 6):
        w, g, b, m, v = branch_params[level]
        outs.append(_spp_block_ref(x, w, g, b, m, v, level, eps))
    return jnp.concatenate(outs, axis=1)


if __name__ == "__main__":
    # Small shapes consistent with the module (in_channel -> out channels per branch).
    N, C_in, C_out, H, W = 2, 32, 16, 16, 16
    levels = (1, 2, 3, 6)

    key = jax.random.PRNGKey(0)
    keys = jax.random.split(key, 1 + 5 * len(levels))
    x = jax.random.normal(keys[0], (N, C_in, H, W), dtype=jnp.float32)

    branch_params = {}
    for idx, level in enumerate(levels):
        kw, kg, kb, km, kv = keys[1 + 5 * idx: 1 + 5 * (idx + 1)]
        w = jax.random.normal(kw, (C_out, C_in), dtype=jnp.float32) * 0.1
        g = jax.random.uniform(kg, (C_out,), minval=0.5, maxval=1.5, dtype=jnp.float32)
        b = jax.random.normal(kb, (C_out,), dtype=jnp.float32) * 0.1
        m = jax.random.normal(km, (C_out,), dtype=jnp.float32) * 0.1
        v = jax.random.uniform(kv, (C_out,), minval=0.5, maxval=1.5, dtype=jnp.float32)
        branch_params[level] = (w, g, b, m, v)

    out = jax.block_until_ready(spp_forward(x, branch_params))
    ref = jax.block_until_ready(spp_forward_ref(x, branch_params))

    assert out.shape == (N, C_in + 4 * C_out, H, W)
    np.testing.assert_allclose(np.asarray(out), np.asarray(ref), rtol=1e-3, atol=1e-3)
    print("KERNEL_OK")
</pallas_src>

<mosaic_0001>
module attributes {stable_mosaic.version = 11 : i64} {
  func.func @_spp_branch_kernel(%arg0: i32, %arg1: i32, %arg2: memref<1x32x256xbf16, #tpu.memory_space<vmem>>, %arg3: memref<256x1xbf16, #tpu.memory_space<vmem>>, %arg4: memref<16x32xbf16, #tpu.memory_space<vmem>>, %arg5: memref<16x1xf32, #tpu.memory_space<vmem>>, %arg6: memref<1x256xbf16, #tpu.memory_space<vmem>>, %arg7: memref<1x16x256xf32, #tpu.memory_space<vmem>>, %arg8: memref<16x1xf32, #tpu.memory_space<vmem>>) attributes {dimension_semantics = [#tpu.dimension_semantics<parallel>, #tpu.dimension_semantics<arbitrary>], iteration_bounds = array<i64: 2, 1>, scalar_prefetch = 0 : i64, scratch_operands = 1 : i64, tpu.core_type = #tpu.core_type<tc>, window_params = [{transform_indices = @transform_0, window_bounds = array<i64: 1, 32, 256>}, {pipeline_mode = #tpu.pipeline_mode<synchronous>, transform_indices = @transform_1, window_bounds = array<i64: 256, 1>}, {transform_indices = @transform_2, window_bounds = array<i64: 16, 32>}, {pipeline_mode = #tpu.pipeline_mode<synchronous>, transform_indices = @transform_3, window_bounds = array<i64: 16, 1>}, {pipeline_mode = #tpu.pipeline_mode<synchronous>, transform_indices = @transform_4, window_bounds = array<i64: 1, 256>}, {transform_indices = @transform_5, window_bounds = array<i64: 1, 16, 256>}]} {
    %c0_i32 = arith.constant 0 : i32
    %0 = arith.cmpi eq, %arg1, %c0_i32 : i32
    %1 = arith.extui %0 : i1 to i32
    %c0_i32_0 = arith.constant 0 : i32
    %2 = arith.cmpi ne, %1, %c0_i32_0 : i32
    scf.if %2 {
      %cst_14 = arith.constant 0.000000e+00 : f32
      %16 = vector.broadcast %cst_14 : f32 to vector<16x1xf32>
      %c0_15 = arith.constant 0 : index
      %c0_16 = arith.constant 0 : index
      %17 = vector.load %arg8[%c0_15, %c0_16] : memref<16x1xf32, #tpu.memory_space<vmem>>, vector<16x1xf32>
      tpu.vector_store %arg8[%c0_15, %c0_16], %16 {strides = array<i32>} : memref<16x1xf32, #tpu.memory_space<vmem>>, vector<16x1xf32>,
    } else {
    }
    %c0 = arith.constant 0 : index
    %c0_1 = arith.constant 0 : index
    %c0_2 = arith.constant 0 : index
    %3 = vector.load %arg2[%c0, %c0_1, %c0_2] : memref<1x32x256xbf16, #tpu.memory_space<vmem>>, vector<1x32x256xbf16>
    %4 = vector.shape_cast %3 : vector<1x32x256xbf16> to vector<32x256xbf16>
    %c0_3 = arith.constant 0 : index
    %c0_4 = arith.constant 0 : index
    %5 = vector.load %arg3[%c0_3, %c0_4] : memref<256x1xbf16, #tpu.memory_space<vmem>>, vector<256x1xbf16>
    %cst = arith.constant dense<0.000000e+00> : vector<32x1xf32>
    %6 = tpu.matmul %4, %5, %cst {dimension_numbers = #tpu.dot_dimension_numbers<[1], [0], [0], [1], [0, 0, 1, 1], [], []>} : vector<32x256xbf16>, vector<256x1xbf16>, vector<32x1xf32> -> vector<32x1xf32>
    %c0_5 = arith.constant 0 : index
    %c0_6 = arith.constant 0 : index
    %7 = vector.load %arg8[%c0_5, %c0_6] : memref<16x1xf32, #tpu.memory_space<vmem>>, vector<16x1xf32>
    %c0_7 = arith.constant 0 : index
    %c0_8 = arith.constant 0 : index
    %8 = vector.load %arg4[%c0_7, %c0_8] : memref<16x32xbf16, #tpu.memory_space<vmem>>, vector<16x32xbf16>
    %9 = arith.truncf %6 : vector<32x1xf32> to vector<32x1xbf16>
    %cst_9 = arith.constant dense<0.000000e+00> : vector<16x1xf32>
    %10 = tpu.matmul %8, %9, %cst_9 {dimension_numbers = #tpu.dot_dimension_numbers<[1], [0], [0], [1], [0, 0, 1, 1], [], []>} : vector<16x32xbf16>, vector<32x1xbf16>, vector<16x1xf32> -> vector<16x1xf32>
    %11 = arith.addf %7, %10 : vector<16x1xf32>
    %c0_10 = arith.constant 0 : index
    %c0_11 = arith.constant 0 : index
    %12 = vector.load %arg8[%c0_10, %c0_11] : memref<16x1xf32, #tpu.memory_space<vmem>>, vector<16x1xf32>
    tpu.vector_store %arg8[%c0_10, %c0_11], %11 {strides = array<i32>} : memref<16x1xf32, #tpu.memory_space<vmem>>, vector<16x1xf32>,
    %c0_i32_12 = arith.constant 0 : i32
    %13 = arith.cmpi eq, %arg1, %c0_i32_12 : i32
    %14 = arith.extui %13 : i1 to i32
    %c0_i32_13 = arith.constant 0 : i32
    %15 = arith.cmpi ne, %14, %c0_i32_13 : i32
    scf.if %15 {
      %c0_14 = arith.constant 0 : index
      %c0_15 = arith.constant 0 : index
      %16 = vector.load %arg8[%c0_14, %c0_15] : memref<16x1xf32, #tpu.memory_space<vmem>>, vector<16x1xf32>
      %c0_16 = arith.constant 0 : index
      %c0_17 = arith.constant 0 : index
      %17 = vector.load %arg5[%c0_16, %c0_17] : memref<16x1xf32, #tpu.memory_space<vmem>>, vector<16x1xf32>
      %18 = arith.addf %16, %17 : vector<16x1xf32>
      %cst_18 = arith.constant 0.000000e+00 : f32
      %19 = vector.broadcast %cst_18 : f32 to vector<16x1xf32>
      %20 = arith.maximumf %18, %19 : vector<16x1xf32>
      %21 = arith.truncf %20 : vector<16x1xf32> to vector<16x1xbf16>
      %c0_19 = arith.constant 0 : index
      %c0_20 = arith.constant 0 : index
      %22 = vector.load %arg6[%c0_19, %c0_20] : memref<1x256xbf16, #tpu.memory_space<vmem>>, vector<1x256xbf16>
      %cst_21 = arith.constant dense<0.000000e+00> : vector<16x256xf32>
      %23 = tpu.matmul %21, %22, %cst_21 {dimension_numbers = #tpu.dot_dimension_numbers<[1], [0], [0], [1], [0, 0, 1, 1], [], []>} : vector<16x1xbf16>, vector<1x256xbf16>, vector<16x256xf32> -> vector<16x256xf32>
      %c0_22 = arith.constant 0 : index
      %c0_23 = arith.constant 0 : index
      %c0_24 = arith.constant 0 : index
      %24 = vector.load %arg7[%c0_22, %c0_23, %c0_24] : memref<1x16x256xf32, #tpu.memory_space<vmem>>, vector<1x16x256xf32>
      %25 = vector.shape_cast %24 : vector<1x16x256xf32> to vector<16x256xf32>
      %26 = vector.shape_cast %23 : vector<16x256xf32> to vector<1x16x256xf32>
      tpu.vector_store %arg7[%c0_22, %c0_23, %c0_24], %26 {strides = array<i32>} : memref<1x16x256xf32, #tpu.memory_space<vmem>>, vector<1x16x256xf32>,
    } else {
    }
    return
  }
  func.func @transform_0(%arg0: i32, %arg1: i32) -> (i32, i32, i32) {
    %c0_i32 = arith.constant 0 : i32
    %c0_i32_0 = arith.constant 0 : i32
    return %arg0, %arg1, %c0_i32 : i32, i32, i32
  }
  func.func @transform_1(%arg0: i32, %arg1: i32) -> (i32, i32) {
    %c0_i32 = arith.constant 0 : i32
    %c0_i32_0 = arith.constant 0 : i32
    %c0_i32_1 = arith.constant 0 : i32
    return %c0_i32, %c0_i32_0 : i32, i32
  }
  func.func @transform_2(%arg0: i32, %arg1: i32) -> (i32, i32) {
    %c0_i32 = arith.constant 0 : i32
    %c0_i32_0 = arith.constant 0 : i32
    return %c0_i32, %arg1 : i32, i32
  }
  func.func @transform_3(%arg0: i32, %arg1: i32) -> (i32, i32) {
    %c0_i32 = arith.constant 0 : i32
    %c0_i32_0 = arith.constant 0 : i32
    %c0_i32_1 = arith.constant 0 : i32
    return %c0_i32, %c0_i32_0 : i32, i32
  }
  func.func @transform_4(%arg0: i32, %arg1: i32) -> (i32, i32) {
    %c0_i32 = arith.constant 0 : i32
    %c0_i32_0 = arith.constant 0 : i32
    %c0_i32_1 = arith.constant 0 : i32
    return %c0_i32, %c0_i32_0 : i32, i32
  }
  func.func @transform_5(%arg0: i32, %arg1: i32) -> (i32, i32, i32) {
    %c0_i32 = arith.constant 0 : i32
    %c0_i32_0 = arith.constant 0 : i32
    %c0_i32_1 = arith.constant 0 : i32
    return %arg0, %c0_i32, %c0_i32_0 : i32, i32, i32
  }
}

</mosaic_0001>

<bundles_post_ra>
// kernel: tpu_custom_call.1
= control target key start
LH: loop header
LB: loop body
LE: loop exit
PB: predicated region body
PF: predicated region fallthrough
CT: control target
= control target key end

     0   :  { %10 = vsyncpa [#allocation4], 0  ;;  %s1132_s0 = inlined_call_operand.vmem [shape: bf16[2,32,256], index: 0, kind: input, shape index: {}]   ;;  %s1133_s1 = inlined_call_operand.vmem [shape: bf16[256,1], index: 1, kind: input, shape index: {}]   ;;  %s1134_s2 = inlined_call_operand.vmem [shape: bf16[16,32], index: 2, kind: input, shape index: {}]   ;;  %s1135_s3 = inlined_call_operand.vmem [shape: f32[16,1], index: 3, kind: input, shape index: {}]   ;;  %s1136_s4 = inlined_call_operand.vmem [shape: bf16[1,256], index: 4, kind: input, shape index: {}]   ;;  %s1137_s5 = inlined_call_operand.hbm [shape: f32[2,16,256], index: 5, kind: output, shape index: {}]  }
   0x1   :  { %12 = vsyncpa [#allocation4 + $0x1], 0  ;;  %s969_s18 = smov 0   ;;  %s971_s19 = smov 0  }
   0x2   :  { %s973_s20 = smov 0   ;;  %s975_s21 = smov 0  }
   0x3   :  { %s977_s22 = smov 0   ;;  %s979_s23 = smov 0  }
   0x4 LB: > { %s672_s24 = sadd.s32 4294967295, %s933_s23   ;;  %s673_s25 = sadd.s32 4294967294, %s933_s23   ;;  %s933_s23 = sphi %s979_s23, %s18_s23   ;;  %s929_s22 = sphi %s977_s22, %s1144_s22   ;;  %s925_s21 = sphi %s975_s21, %s1143_s21   ;;  %s921_s20 = sphi %s973_s20, %s1142_s20   ;;  %s917_s19 = sphi %s971_s19, %s1141_s19   ;;  %s913_s18 = sphi %s969_s18, %s1140_s18  }
   0x5   : > { %s30_s26 = sadd.s32 1, %s929_s22  ;;  %s154_s27 = sadd.s32 1, %s921_s20 }
   0x6   : > { %p32_p0 = scmp.ge.s32.totalorder %s30_s26, 2  ;;  %p164_p1 = scmp.ne.s32.totalorder %s921_s20, %s917_s19 }
   0x7   : > { %p165_p2 = scmp.eq.s32.totalorder %s672_s24, 1  ;;  %p170_p3 = scmp.ne.s32.totalorder %s917_s19, %s913_s18 }
   0x8   : > { %s1146_s26 = smov (%p32_p0, %s30_s26), 0  ;;  %p171_p5 = scmp.eq.s32.totalorder %s673_s25, 1 }
   0x9   : > { %p1009_p4 = por %p165_p2, %p164_p1  ;;  %s151_s29 = ssub.s32 %s929_s22, %s1146_s26 }
   0xa   : > { %p677_p6 = scmp.ge.s32.totalorder %s933_s23, 1  ;;  %p152_p7 = scmp.eq.s32.totalorder %s151_s29, 0 }
   0xb   : > { %p1016_p8 = por %p171_p5, %p170_p3  ;;  %p219_p9 = scmp.lt.s32.totalorder %s933_s23, 3 }
   0xc   : > { %s1022_s6 = scalar_select %p152_p7, %s921_s20, %s154_s27  }
   0xd   : > { %p220_p10 = pnand %p677_p6, %p219_p9 }
   0xe   : > { %p257_p11 = scmp.lt.s32.totalorder (!%p220_p10), %s925_s21, 1  ;;  %s253_s7 = sand.u32 (!%p220_p10), 1, %s917_s19  }
   0xf   : > { %223 = sbr.rel (%p220_p10) target bundleno = 530 (0x212), region = 40  ;;  %s678_s8 = sshll.u32 (!%p220_p10), %s253_s7, 5 }
  0x10   : > { %s795_s10 = sshll.u32 (!%p220_p10), %s925_s21, 5  ;;  %s563_s16 = scalar_lea.sflag (!%p220_p10), [#allocation4], %s253_s7 }
  0x11   : > { %s875_s27 = scalar_lea.hbm (!%p220_p10), %s1137_s5, 64 }
  0x14   : > { %v785_v0 = vld [vmem:[%s1133_s1 + $0x38] sm:$0xff]  ;;  %v784_v2 = vld [vmem:[%s1133_s1 + $0x30] sm:$0xff]  ;;  %v783_v4 = vld [vmem:[%s1133_s1 + $0x28] sm:$0xff]  ;;  %s258_s12 = scalar_select %p257_p11, %s925_s21, 1  ;;  %vm276_vm0 = vcmask 7168   ;;  %v935_v30 = vmov 0.0  }
  0x15   : > { %v793_v1 = vld [vmem:[%s1133_s1 + $0x78] sm:$0xff]  ;;  %431 = vmatpush.bf16.msra.mxu0 %v785_v0  ;;  %v792_v3 = vld [vmem:[%s1133_s1 + $0x70] sm:$0xff]  ;;  %v791_v5 = vld [vmem:[%s1133_s1 + $0x68] sm:$0xff]  ;;  %277 = vst.msk [vmem:[#allocation2] sm:$0xff] %vm276_vm0, %v935_v30  ;;  %vm480_vm1 = vcmask 261120   ;;  %vm523_vm2 = vcmask 1040384  }
  0x16   : > { %450 = vmatpush.bf16.msra.mxu1 %v793_v1  ;;  %v782_v6 = vld [vmem:[%s1133_s1 + $0x20] sm:$0xff]  ;;  %v781_v8 = vld [vmem:[%s1133_s1 + $0x18] sm:$0xff]  ;;  %v780_v10 = vld [vmem:[%s1133_s1 + $0x10] sm:$0xff]  ;;  %s773_s17 = sshll.u32 %s258_s12, 5  ;;  %278 = vst.msk [vmem:[#allocation2 + $0x8] sm:$0xff] %vm276_vm0, %v935_v30  ;;  %v936_v45 = vmov 0   ;;  %s574_s12 = scalar_lea.hbm %s1137_s5, %s795_s10 }
  0x17   : > { %v790_v7 = vld [vmem:[%s1133_s1 + $0x60] sm:$0xff]  ;;  %v789_v9 = vld [vmem:[%s1133_s1 + $0x58] sm:$0xff]  ;;  %v788_v11 = vld [vmem:[%s1133_s1 + $0x50] sm:$0xff]  ;;  %s265_s9 = scalar_lea.vmem %s1132_s0, %s773_s17  ;;  %v525_v46 = vsel %vm523_vm2, 65535, %v936_v45  ;;  %s577_s15 = sshll.u32 %s574_s12, 4  ;;  %s578_s15 = int_to_ptr.hbm [resolvable:$true] %s577_s15 }
  0x18   : > { %v779_v12 = vld [vmem:[%s1133_s1 + $0x8] sm:$0xff]  ;;  %v778_v14 = vld [vmem:[%s1133_s1] sm:$0xff]  ;;  %v691_v22 = vld [vmem:[%s265_s9 + $0x10] sm:$0xf]  ;;  %s869_s17 = sshra.s32 %s578_s15, 4  ;;  %s870_s17 = int_to_ptr.hbm [resolvable:$true] %s869_s17 }
  0x19   : > { %432 = vmatpush.bf16.msra.mxu0 %v784_v2  ;;  %v787_v13 = vld [vmem:[%s1133_s1 + $0x48] sm:$0xff]  ;;  %v786_v15 = vld [vmem:[%s1133_s1 + $0x40] sm:$0xff]  ;;  %v777_v23 = vld [vmem:[%s265_s9 + $0x14] sm:$0xf0]  ;;  %s871_s24 = scalar_lea.hbm %s870_s17, 32  ;;  %p876_p1 = scmp.lt.s32.totalorder %s870_s17, %s1137_s5 }
  0x1a   : > { %451 = vmatpush.bf16.msra.mxu1 %v792_v3  ;;  %v683_v16 = vld [vmem:[%s265_s9] sm:$0xf]  ;;  %v775_v17 = vld [vmem:[%s265_s9 + $0x4] sm:$0xf0]  ;;  %v774_v18 = vld [vmem:[%s265_s9 + $0x4] sm:$0xf]  ;;  %v692_v26 = vor.u32 %v777_v23, %v691_v22  ;;  %p872_p12 = scmp.ne.s32.totalorder %s870_s17, %s871_s24  ;;  %p877_p2 = scmp.lt.s32.totalorder %s875_s27, %s871_s24 }
  0x1b   : > { %v685_v19 = vld [vmem:[%s265_s9 + $0x8] sm:$0xf0]  ;;  %v684_v20 = vor.u32 %v775_v17, %v683_v16  ;;  %v776_v24 = vld [vmem:[%s265_s9 + $0x14] sm:$0xf]  ;;  %v693_v25 = vld [vmem:[%s265_s9 + $0x18] sm:$0xf0] }
  0x1c   : > { %v688_v21 = vor.u32 %v774_v18, %v685_v19  ;;  %v696_v27 = vor.u32 %v776_v24, %v693_v25  ;;  %v794_v43 = vld [vmem:[%s1134_s2] sm:$0xff]  ;;  %v469_v51 = vld [vmem:[#allocation2] sm:$0xff]  ;;  %s255_s9 = scalar_lea.vmem [#allocation3], %s678_s8  ;;  %p873_p13 = pnand %p872_p12, %p1009_p4 }
  0x1d   : > { %433 = vmatpush.bf16.msra.mxu0 %v783_v4  ;;  %v515_v44 = vld [vmem:[%s1136_s4] sm:$0x3]  ;;  %v470_v54 = vld [vmem:[#allocation2 + $0x8] sm:$0xff]  ;;  %v509_v59 = vld [vmem:[%s1135_s3 + $0x8] sm:$0xff]  ;;  %s575_s14 = sshll.u32 %s255_s9, 4  ;;  %p878_p3 = por %p877_p2, %p876_p1  ;;  %s576_s14 = int_to_ptr.vmem [resolvable:$true] %s575_s14 }
  0x1e   : > { %452 = vmatpush.bf16.msra.mxu1 %v791_v5  ;;  %517 = vst [vmem:[#allocation1] ss:$9 sm:$0xff] %v515_v44  ;;  %v508_v58 = vld [vmem:[%s1135_s3] sm:$0xff]  ;;  %p874_p0 = pneg %p873_p13 }
  0x20   : > { %p879_p5 = pnand %p878_p3, %p874_p0 }
  0x21   : > { %434 = vmatpush.bf16.msra.mxu0 %v782_v6 }
  0x22   : > { %453 = vmatpush.bf16.msra.mxu1 %v790_v7 }
  0x25   : > { %435 = vmatpush.bf16.msra.mxu0 %v781_v8  ;;  %v518_v47 = vld [vmem:[#allocation1] sm:$0xff]  ;;  %v519_v49 = vld [vmem:[#allocation1 + $0x9] sm:$0xff] }
  0x26   : > { %454 = vmatpush.bf16.msra.mxu1 %v789_v9  ;;  %v526_v48 = vand.u32 %v525_v46, %v518_v47  ;;  %v528_v50 = vand.u32 %v525_v46, %v519_v49 }
  0x28   : > { %537 = vmatpush.bf16.msra.mxu3 %v526_v48 }
  0x29   : > { %436 = vmatpush.bf16.msra.mxu0 %v780_v10 }
  0x2a   : > { %455 = vmatpush.bf16.msra.mxu1 %v788_v11 }
  0x2c   : > { %551 = vmatpush.bf16.msrb.mxu3 %v528_v50 }
  0x2d   : > { %437 = vmatpush.bf16.msra.mxu0 %v779_v12 }
  0x2e   : > { %456 = vmatpush.bf16.msra.mxu1 %v787_v13 }
  0x31   : > { %438 = vmatpush.bf16.msra.mxu0 %v778_v14 }
  0x32   : > { %457 = vmatpush.bf16.msra.mxu1 %v786_v15 }
  0x34   : > { %439 = vmatmul.bf16.vlgmr.msra.gmra.mxu0 %v684_v20 }
  0x35   : > { %458 = vmatmul.bf16.vlgmr.msra.gmra.mxu1 %v688_v21 }
  0x44   : > { %444 = vmatmul.bf16.gmra.mxu0 %v692_v26 }
  0x45   : > { %463 = vmatmul.bf16.gmra.mxu1 %v696_v27 }
  0xb1   : > { %v440_v28 = vpop.f32.mrf.mxu0 }
  0xb2   : > { %v459_v29 = vpop.f32.mrf.mxu1 }
  0xb3   : > { %v460_v41 = vadd.f32 %v459_v29, %v440_v28 }
  0xb9   : > { %v442_v31 = vpop.f32.mrf.mxu0 }
  0xba   : > { %v461_v32 = vpop.f32.mrf.mxu1 }
  0xbb   : > { %v462_v39 = vadd.f32 %v461_v32, %v442_v31 }
  0xbd   : > { %v473_v42 = vpack.c.bf16 %v462_v39, %v460_v41 }
  0xc1   : > { %v445_v33 = vpop.f32.mrf.mxu0 }
  0xc2   : > { %v464_v34 = vpop.f32.mrf.mxu1 }
  0xc3   : > { %v465_v37 = vadd.f32 %v464_v34, %v445_v33 }
  0xc9   : > { %v447_v35 = vpop.f32.mrf.mxu0 }
  0xca   : > { %v466_v36 = vpop.f32.mrf.mxu1 }
  0xcb   : > { %v467_v38 = vadd.f32 %v466_v36, %v447_v35 }
  0xcd   : > { %v474_v40 = vpack.c.bf16 %v467_v38, %v465_v37 }
  0xcf   : > { %490 = vmatpush.bf16.msra.mxu2 %v474_v40 }
  0xd3   : > { %491 = vmatpush.bf16.msra.mxu2 %v473_v42 }
  0xd6   : > { %765 = vmatmul.msk.bf16.vlgmr.msra.gmra.mxu2 %vm480_vm1, %v794_v43 }
 0x159   : > { %v493_v52 = vpop.f32.mrf.mxu2 }
 0x15a   : > { %v498_v53 = vadd.f32 %v493_v52, %v469_v51 }
 0x15c   : > { %501 = vst.msk [vmem:[#allocation2] sm:$0xff] %vm276_vm0, %v498_v53 }
 0x161   : > { %v495_v55 = vpop.f32.mrf.mxu2 }
 0x162   : > { %v499_v56 = vadd.f32 %v495_v55, %v470_v54 }
 0x163   : > { %v506_v57 = vld [vmem:[#allocation2] sm:$0xff] }
 0x164   : > { %502 = vst.msk [vmem:[#allocation2 + $0x8] sm:$0xff] %vm276_vm0, %v499_v56  ;;  %v510_v60 = vadd.f32 %v508_v58, %v506_v57 }
 0x166   : > { %v512_v63 = vmax.f32 %v510_v60, 0.0 }
 0x16b   : > { %v507_v61 = vld [vmem:[#allocation2 + $0x8] sm:$0xff] }
 0x16c   : > { %v511_v62 = vadd.f32 %v509_v59, %v507_v61 }
 0x16e   : > { %v513_v0 = vmax.f32 %v511_v62, 0.0 }
 0x170   : > { %v514_v1 = vpack.c.bf16 %v513_v0, %v512_v63 }
 0x172   : > { %766 = vmatmul.msk.bf16.vlgmr.msra.gmra.mxu3 %vm276_vm0, %v514_v1 }
 0x182   : > { %767 = vmatmul.msk.bf16.vlgmr.msrb.gmra.mxu3 %vm276_vm0, %v514_v1 }
 0x1f5   : > { %v539_v2 = vpop.f32.mrf.mxu3 }
 0x1f6   : > { %558 = vst [vmem:[%s255_s9] sm:$0xff] %v539_v2 }
 0x1fd   : > { %v541_v3 = vpop.f32.mrf.mxu3 }
 0x1fe   : > { %560 = vst [vmem:[%s255_s9 + $0x10] sm:$0xff] %v541_v3 }
 0x205   : > { %v553_v4 = vpop.f32.mrf.mxu3 }
 0x206   : > { %559 = vst [vmem:[%s255_s9 + $0x8] sm:$0xff] %v553_v4 }
 0x20d   : > { %v555_v5 = vpop.f32.mrf.mxu3 }
 0x20e   : > { %561 = vst [vmem:[%s255_s9 + $0x18] sm:$0xff] %v555_v5 }
 0x20f   : > { %882 = shalt.err (!%p879_p5)
}
 0x210   : > { %s937_s7 = smov 256   ;;  %s938_s9 = smov 16  }
 0x211   : > { %796 = dma.vmem_to_hbm [thread:$0]  (%p1009_p4), %s576_s14, 512, %s578_s15, %s563_s16, %s937_s7, %s937_s7, %s938_s9  }
 0x212 PF: > { %p802_p6 = scmp.ge.s32.totalorder %s933_s23, 2  ;;  %s592_s10 = sand.u32 1, %s913_s18  }
 0x213   : > { %s593_s11 = scalar_lea.sflag [#allocation4], %s592_s10 }
 0x214   : > { %p799_p7 = pnand %p802_p6, %p1016_p8 }
 0x216   : > { %p800_p9 = pneg %p799_p7 }
 0x218   : > { %908 = dma.done.wait (%p800_p9), %s593_s11, 512  }
 0x219   : > { %910 = vsyncadd (%p800_p9), %s593_s11, 4294966784  ;;  %s18_s23 = sadd.s32 1, %s933_s23   ;;  %s1140_s18 = smov %s917_s19 }
 0x21a   : > { %p15_p10 = scmp.ge.s32.totalorder %s18_s23, 4   ;;  %s1141_s19 = smov %s921_s20 }
 0x21b   : > { %s1142_s20 = smov %s1022_s6  ;;  %s1143_s21 = smov %s929_s22 }
 0x21c   : > { %s1144_s22 = smov %s1146_s26  ;;  %17 = sbr.rel (!%p15_p10) target bundleno = 4 (0x4), region = 86 }
 0x221   :  { %599 = vsyncpa [#allocation4], 1 }
 0x222   :  { %601 = vsyncpa [#allocation4 + $0x1], 1 }

</bundles_post_ra>
